<compile_context>
chip_gen: v7x
topology: tpu7x:2x2x1
jax: 0.10.0
libtpu: 0.0.40
codegen_flags: <defaults>
</compile_context>

<pallas_src>
import jax
import jax.numpy as jnp
from jax.experimental import pallas as pl
from jax.experimental.pallas import tpu as pltpu

_LANE = 128
_SUBLANE = 8


def _round_up(x: int, m: int) -> int:
    return ((x + m - 1) // m) * m


def _vmem_budget():
    """Generation-aware VMEM budgeting.

    Returns (max_block_bytes, vmem_limit_bytes).  Input and output blocks are
    each double-buffered (4 block-sized buffers live at once), so we keep
    4 * max_block_bytes at or below half the scoped limit, which itself stays
    well under physical VMEM (64 MiB per TC on v7x, 128 MiB on v5e/v6e).
    """
    phys = 64 * 1024 * 1024  # conservative default = v7x per-TC VMEM
    try:
        phys = int(getattr(pltpu.get_tpu_info(), "vmem_capacity_bytes", phys))
    except Exception:
        pass
    vmem_limit = min((phys * 3) // 4, 96 * 1024 * 1024)
    max_block_bytes = vmem_limit // 8
    return max_block_bytes, vmem_limit


def _pick_tiles(M: int, N: int, itemsize: int, max_block_bytes: int):
    """Pick a (TM, TN) block shape for a cdiv (ragged-tolerant) grid."""
    m_pad = _round_up(M, _SUBLANE)
    n_pad = _round_up(N, _LANE)

    # Lane dim first: as wide as the budget allows assuming the minimum TM=8.
    max_tn = max(_LANE, (max_block_bytes // (_SUBLANE * itemsize)) // _LANE * _LANE)
    tn = min(n_pad, max_tn)

    # Sublane dim: fill the remaining byte budget.
    max_tm = max(_SUBLANE, (max_block_bytes // (tn * itemsize)) // _SUBLANE * _SUBLANE)
    tm = min(m_pad, max_tm)

    # v7x has 2 TensorCores sharing HBM: ensure >= 2 blocks along a "parallel"
    # axis whenever the input is big enough (neutral on v5e/v6e's single TC).
    if pl.cdiv(M, tm) * pl.cdiv(N, tn) < 2:
        if m_pad >= 2 * _SUBLANE:
            tm = _round_up(pl.cdiv(m_pad, 2), _SUBLANE)
        elif n_pad >= 2 * _LANE:
            tn = _round_up(pl.cdiv(n_pad, 2), _LANE)
    return tm, tn


def _scale_kernel(x_ref, s_ref, o_ref):
    # x_ref: (TM, TN) tile of flattened (channel-row, pixel) data.
    # s_ref: (M_pad, 1) fully VMEM-resident per-row scale (fetched once).
    tm = o_ref.shape[0]
    start = pl.multiple_of(pl.program_id(0) * tm, tm)
    s = s_ref[pl.ds(start, tm), :]  # (TM, 1): broadcasts across lanes
    o_ref[...] = x_ref[...].astype(o_ref.dtype) * s


def adaptive_color_shift_pallas(x: jax.Array, scale: jax.Array) -> jax.Array:
    """output = x * scale, with scale (C,) broadcast over the channel axis."""
    if x.ndim == 4:
        B, C, H, W = x.shape
        rows = B * C
        row_scale = jnp.tile(scale, B)  # (B*C,): a handful of floats
    elif x.ndim == 3:
        C, H, W = x.shape
        rows = C
        row_scale = scale
    else:
        raise ValueError("expected 3D (C,H,W) or 4D (B,C,H,W) input")
    if scale.shape != (C,):
        raise ValueError(f"scale must have shape ({C},), got {scale.shape}")

    # PyTorch promotes int * float -> float; float inputs stay in their dtype
    # (bf16 multiplies in bf16 — mem-bound either way, halves vreg traffic).
    out_dtype = x.dtype if jnp.issubdtype(x.dtype, jnp.floating) else jnp.float32

    M, N = rows, H * W
    x2 = x.reshape(M, N)  # layout-preserving reshape, no HBM copy

    max_block_bytes, vmem_limit = _vmem_budget()
    itemsize = max(jnp.dtype(x.dtype).itemsize, jnp.dtype(out_dtype).itemsize)
    TM, TN = _pick_tiles(M, N, itemsize, max_block_bytes)
    grid = (pl.cdiv(M, TM), pl.cdiv(N, TN))

    # Pad the tiny per-row scale so the in-kernel pl.ds window never runs past
    # the resident buffer; cast once to the compute dtype.
    M_pad = grid[0] * TM
    s2 = jnp.pad(row_scale.astype(out_dtype), (0, M_pad - M)).reshape(M_pad, 1)

    bytes_accessed = M * N * (jnp.dtype(x.dtype).itemsize
                              + jnp.dtype(out_dtype).itemsize)

    out = pl.pallas_call(
        _scale_kernel,
        out_shape=jax.ShapeDtypeStruct((M, N), out_dtype),
        grid_spec=pltpu.PrefetchScalarGridSpec(
            num_scalar_prefetch=0,
            grid=grid,
            in_specs=[
                pl.BlockSpec((TM, TN), lambda i, j: (i, j)),
                pl.BlockSpec((M_pad, 1), lambda i, j: (0, 0)),  # resident scale
            ],
            out_specs=pl.BlockSpec((TM, TN), lambda i, j: (i, j)),
        ),
        compiler_params=pltpu.CompilerParams(
            dimension_semantics=("parallel", "parallel"),
            vmem_limit_bytes=vmem_limit,
        ),
        cost_estimate=pl.CostEstimate(
            flops=M * N, transcendentals=0, bytes_accessed=bytes_accessed),
    )(x2, s2)

    return out.reshape(x.shape)


class AdaptiveColorShift:
    """JAX/Pallas port of AdaptiveColorShift (random per-channel color scaling)."""

    def __init__(self):
        # nn.Parameter(torch.ones(1)) equivalents (inference values).
        self.r_ratio = jnp.ones((1,), jnp.float32)
        self.g_ratio = jnp.ones((1,), jnp.float32)
        self.b_ratio = jnp.ones((1,), jnp.float32)

    def sample_scale(self, key: jax.Array) -> jax.Array:
        r = jax.nn.sigmoid(self.r_ratio)[0]
        g = jax.nn.sigmoid(self.g_ratio)[0]
        b = jax.nn.sigmoid(self.b_ratio)[0]
        kr, kg, kb = jax.random.split(key, 3)
        one = jnp.float32(1.0)
        # TODO(synk): torch.distributions.Uniform uses torch's RNG stream; we draw
        # the same Uniform(1-c, 1+c) distribution with jax.random (different bits).
        r_w = jax.random.uniform(kr, (), jnp.float32, one - r, one + r)
        g_w = jax.random.uniform(kg, (), jnp.float32, one - g, one + g)
        b_w = jax.random.uniform(kb, (), jnp.float32, one - b, one + b)
        return jnp.stack([r_w, g_w, b_w])

    def __call__(self, x: jax.Array, key: jax.Array) -> jax.Array:
        scale = self.sample_scale(key)
        return adaptive_color_shift_pallas(x, scale)


def _reference_color_shift(x, scale):
    """Pure-JAX reference for verification."""
    if x.ndim == 4:
        return (x.astype(jnp.float32) * scale.reshape(1, -1, 1, 1)).astype(x.dtype)
    return (x.astype(jnp.float32) * scale.reshape(-1, 1, 1)).astype(x.dtype)


if __name__ == "__main__":
    key = jax.random.PRNGKey(0)
    kx, ks = jax.random.split(key)
    B, C, H, W = 2, 3, 16, 16  # module implies 3 (RGB) channels
    x = jax.random.normal(kx, (B, C, H, W), dtype=jnp.float32)

    module = AdaptiveColorShift()
    y = jax.block_until_ready(module(x, ks))

    scale = module.sample_scale(ks)  # same key -> same scale as inside __call__
    y_ref = _reference_color_shift(x, scale)
    assert y.shape == (B, C, H, W) and y.dtype == x.dtype
    assert jnp.allclose(y, y_ref, atol=1e-6, rtol=1e-6), "mismatch vs reference (4D)"

    # Also exercise the 3D (C, H, W) branch of the forward.
    x3 = x[0]
    y3 = jax.block_until_ready(module(x3, ks))
    y3_ref = _reference_color_shift(x3, scale)
    assert jnp.allclose(y3, y3_ref, atol=1e-6, rtol=1e-6), "mismatch vs reference (3D)"

    print("KERNEL_OK")
</pallas_src>

<mosaic_0001>
module attributes {stable_mosaic.version = 11 : i64} {
  func.func @_scale_kernel(%arg0: i32, %arg1: i32, %arg2: memref<8x128xf32, #tpu.memory_space<vmem>>, %arg3: memref<8x1xf32, #tpu.memory_space<vmem>>, %arg4: memref<8x128xf32, #tpu.memory_space<vmem>>) attributes {dimension_semantics = [#tpu.dimension_semantics<parallel>, #tpu.dimension_semantics<parallel>], iteration_bounds = array<i64: 1, 2>, scalar_prefetch = 0 : i64, scratch_operands = 0 : i64, tpu.core_type = #tpu.core_type<tc>, window_params = [{transform_indices = @transform_0, window_bounds = array<i64: 8, 128>}, {pipeline_mode = #tpu.pipeline_mode<synchronous>, transform_indices = @transform_1, window_bounds = array<i64: 8, 1>}, {transform_indices = @transform_2, window_bounds = array<i64: 8, 128>}]} {
    %c8_i32 = arith.constant 8 : i32
    %0 = arith.muli %arg0, %c8_i32 : i32
    %1 = tpu.assume_multiple %0, 8 : i32
    %2 = arith.index_cast %1 : i32 to index
    %c0 = arith.constant 0 : index
    %3 = vector.load %arg3[%2, %c0] : memref<8x1xf32, #tpu.memory_space<vmem>>, vector<8x1xf32>
    %c0_0 = arith.constant 0 : index
    %c0_1 = arith.constant 0 : index
    %4 = vector.load %arg2[%c0_0, %c0_1] : memref<8x128xf32, #tpu.memory_space<vmem>>, vector<8x128xf32>
    %5 = vector.broadcast %3 : vector<8x1xf32> to vector<8x128xf32>
    %6 = arith.mulf %4, %5 : vector<8x128xf32>
    %c0_2 = arith.constant 0 : index
    %c0_3 = arith.constant 0 : index
    %7 = vector.load %arg4[%c0_2, %c0_3] : memref<8x128xf32, #tpu.memory_space<vmem>>, vector<8x128xf32>
    tpu.vector_store %arg4[%c0_2, %c0_3], %6 {strides = array<i32>} : memref<8x128xf32, #tpu.memory_space<vmem>>, vector<8x128xf32>,
    return
  }
  func.func @transform_0(%arg0: i32, %arg1: i32) -> (i32, i32) {
    %c0_i32 = arith.constant 0 : i32
    return %arg0, %arg1 : i32, i32
  }
  func.func @transform_1(%arg0: i32, %arg1: i32) -> (i32, i32) {
    %c0_i32 = arith.constant 0 : i32
    %c0_i32_0 = arith.constant 0 : i32
    %c0_i32_1 = arith.constant 0 : i32
    return %c0_i32, %c0_i32_0 : i32, i32
  }
  func.func @transform_2(%arg0: i32, %arg1: i32) -> (i32, i32) {
    %c0_i32 = arith.constant 0 : i32
    return %arg0, %arg1 : i32, i32
  }
}

</mosaic_0001>

<bundles_post_ra>
// kernel: tpu_custom_call.1
= control target key start
LH: loop header
LB: loop body
LE: loop exit
PB: predicated region body
PF: predicated region fallthrough
CT: control target
= control target key end

     0   :  { %7 = vsyncpa [#allocation3], 0  ;;  %s672_s0 = inlined_call_operand.hbm [shape: f32[6,256], index: 0, kind: input, shape index: {}]   ;;  %s673_s1 = inlined_call_operand.vmem [shape: f32[8,1], index: 1, kind: input, shape index: {}]   ;;  %s674_s2 = inlined_call_operand.hbm [shape: f32[6,256], index: 2, kind: output, shape index: {}]  }
   0x1   :  { %9 = vsyncpa [#allocation3 + $0x1], 0 }
   0x2   :  { %10 = vsyncpa [#allocation4], 0 }
   0x3   :  { %12 = vsyncpa [#allocation4 + $0x1], 0  ;;  %s497_s9 = smov 0   ;;  %s499_s10 = smov 0  }
   0x4   :  { %s501_s11 = smov 0   ;;  %s503_s12 = smov 0  }
   0x5   :  { %s505_s13 = smov 0   ;;  %s507_s14 = smov 0  }
   0x6 LB: > { %s288_s15 = sadd.s32 4294967295, %s477_s14   ;;  %s289_s16 = sadd.s32 4294967294, %s477_s14   ;;  %s477_s14 = sphi %s507_s14, %s18_s14   ;;  %s473_s13 = sphi %s505_s13, %s690_s13   ;;  %s469_s12 = sphi %s503_s12, %s689_s12   ;;  %s465_s11 = sphi %s501_s11, %s688_s11   ;;  %s461_s10 = sphi %s499_s10, %s687_s10   ;;  %s457_s9 = sphi %s497_s9, %s686_s9  }
   0x7   : > { %s27_s17 = sadd.s32 1, %s473_s13  ;;  %s39_s18 = sadd.s32 1, %s465_s11 }
   0x8   : > { %p28_p0 = scmp.ge.s32.totalorder %s27_s17, 2  ;;  %p46_p1 = scmp.ne.s32.totalorder %s465_s11, %s461_s10 }
   0x9   : > { %p47_p2 = scmp.eq.s32.totalorder %s477_s14, 0  ;;  %p52_p3 = scmp.ne.s32.totalorder %s461_s10, %s457_s9 }
   0xa   : > { %s692_s17 = smov (%p28_p0, %s27_s17), 0  ;;  %p53_p5 = scmp.eq.s32.totalorder %s288_s15, 0 }
   0xb   : > { %p538_p4 = por %p47_p2, %p46_p1  ;;  %s35_s20 = ssub.s32 %s473_s13, %s692_s17 }
   0xc   : > { %p99_p6 = scmp.eq.s32.totalorder %s288_s15, 1  ;;  %p37_p7 = scmp.eq.s32.totalorder %s35_s20, 0 }
   0xd   : > { %p544_p8 = por %p53_p5, %p52_p3  ;;  %p105_p10 = scmp.eq.s32.totalorder %s289_s16, 1 }
   0xe   : > { %p548_p9 = por %p99_p6, %p46_p1  ;;  %p313_p13 = scmp.lt.s32.totalorder %s477_s14, 2 }
   0xf   : > { %s553_s23 = scalar_select %p37_p7, %s465_s11, %s39_s18  }
  0x10   : > { %s678_s22 = scalar_select %p548_p9, 1, 0 }
  0x11   : > { %p555_p11 = por %p105_p10, %p52_p3  ;;  %s128_s25 = sand.u32 1, %s465_s11  }
  0x12   : > { %s292_s26 = sshll.u32 %s128_s25, 3  ;;  %s293_s27 = sshll.u32 %s473_s13, 7 }
  0x13   : > { %s679_s24 = scalar_select %p555_p11, 1, 0 }
  0x14   : > { %s566_s30 = scalar_lea.hbm %s672_s0, %s293_s27  ;;  %s132_s3 = scalar_lea.vmem [#allocation2], %s292_s26 }
  0x15   : > { %s141_s4 = sshll.u32 %s132_s3, 4  ;;  %p572_p0 = pnand %p313_p13, %p538_p4  ;;  %s568_s4 = int_to_ptr.vmem [resolvable:$true] %s141_s4 }
  0x16   : > { %s129_s6 = scalar_lea.sflag [#allocation3], %s128_s25  ;;  %s365_s7 = scalar_lea.hbm %s566_s30, 128 }
  0x17   : > { %p366_p3 = scmp.ne.s32.totalorder %s566_s30, %s365_s7  ;;  %p367_p5 = pneg %p572_p0 }
  0x18   : > { %s370_s16 = scalar_lea.hbm %s672_s0, 256  ;;  %p371_p4 = scmp.lt.u32.totalorder %s566_s30, %s672_s0 }
  0x19   : > { %p368_p6 = pnand %p367_p5, %p366_p3  ;;  %p372_p10 = scmp.lt.u32.totalorder %s370_s16, %s365_s7 }
  0x1a   : > { %p374_p12 = scmp.lt.u32.totalorder %s365_s7, %s566_s30 }
  0x1b   : > { %p369_p7 = pneg %p368_p6  ;;  %p373_p13 = por %p372_p10, %p371_p4 }
  0x1d   : > { %p375_p1 = por %p374_p12, %p373_p13 }
  0x1f   : > { %p376_p2 = pnand %p375_p1, %p369_p7 }
  0x21   : > { %379 = shalt.err (!%p376_p2)
}
  0x22   : > { %s380_s20 = scalar_lea.vmem %s568_s4, 128  ;;  %s479_s25 = smov [#allocation2]  }
  0x23   : > { %p381_p3 = scmp.ne.s32.totalorder %s568_s4, %s380_s20  ;;  %s385_s26 = sshll.u32 %s479_s25, 4  ;;  %s386_s26 = int_to_ptr.vmem [resolvable:$false] %s385_s26 }
  0x24   : > { %s387_s27 = scalar_lea.vmem %s386_s26, 256  ;;  %p388_p9 = scmp.lt.s32.totalorder %s568_s4, %s386_s26 }
  0x25   : > { %p383_p6 = pnand %p381_p3, %p367_p5  ;;  %p389_p4 = scmp.lt.s32.totalorder %s387_s27, %s380_s20 }
  0x27   : > { %p384_p11 = pneg %p383_p6  ;;  %p390_p10 = por %p389_p4, %p388_p9 }
  0x29   : > { %p391_p12 = pnand %p390_p10, %p384_p11 }
  0x2b   : > { %394 = shalt.err (!%p391_p12)
}
  0x2c   : > { %308 = dma.hbm_to_vmem [thread:$0]  (!%p572_p0), %s566_s30, 128, %s568_s4, %s129_s6  }
  0x2d   : > { %p681_p1 = scmp.lt.s32.totalorder %s477_s14, 3  ;;  %p682_p2 = scmp.ge.s32.totalorder %s477_s14, 1 }
  0x2f   : > { %p147_p5 = pnand %p682_p2, %p681_p1 }
  0x30   : > { %s608_s28 = sand.u32 (!%p147_p5), 1, %s461_s10  }
  0x31   : > { %150 = sbr.rel (%p147_p5) target bundleno = 203 (0xcb), region = 28  ;;  %s295_s29 = sshll.u32 (!%p147_p5), %s608_s28, 3 }
  0x32   : > { %s153_s3 = scalar_lea.sflag (!%p147_p5), [#allocation3], %s608_s28  ;;  %s156_s7 = scalar_lea.vmem (!%p147_p5), [#allocation2], %s295_s29 }
  0x38   : > { %448 = dma.done.wait (%p544_p8), %s153_s3, 128  }
  0x39   : > { %450 = vsyncadd (%p544_p8), %s153_s3, 4294967168  ;;  %v480_v0 = vmov 0   ;;  %v179_v1 = vld [vmem:[%s673_s1] sm:$0xff]  ;;  %s298_s5 = sshll.u32 %s469_s12, 7  ;;  %s176_s6 = scalar_lea.vmem [#allocation5], %s295_s29 }
  0x3a   : > { %364 = vset.pattern.permute.xlu0 %v480_v0  ;;  %v180_v2 = vld [vmem:[%s156_s7] sm:$0xff]  ;;  %s204_s8 = sshll.u32 %s176_s6, 4  ;;  %s623_s21 = scalar_lea.hbm %s674_s2, %s298_s5  ;;  %s625_s8 = int_to_ptr.vmem [resolvable:$true] %s204_s8 }
  0x3b   : > { %183 = vperm.xlu0 %364, %v179_v1   ;;  %s189_s18 = scalar_lea.sflag [#allocation4], %s608_s28  ;;  %s395_s19 = scalar_lea.vmem %s625_s8, 128 }
  0x3c   : > { %p396_p8 = scmp.ne.s32.totalorder %s625_s8, %s395_s19  ;;  %p683_p9 = scmp.ne.s32.totalorder %s678_s22, 0 }
  0x3d   : > { %s481_s12 = smov [#allocation5]  }
  0x3e   : > { %p397_p11 = pnand %p396_p8, %p683_p9  ;;  %s399_s20 = sshll.u32 %s481_s12, 4  ;;  %s400_s20 = int_to_ptr.vmem [resolvable:$false] %s399_s20 }
  0x3f   : > { %s401_s25 = scalar_lea.vmem %s400_s20, 256  ;;  %p402_p7 = scmp.lt.s32.totalorder %s625_s8, %s400_s20 }
  0x40   : > { %p398_p0 = pneg %p397_p11  ;;  %p403_p13 = scmp.lt.s32.totalorder %s401_s25, %s395_s19 }
  0x42   : > { %p404_p3 = por %p403_p13, %p402_p7 }
  0x44   : > { %p405_p6 = pnand %p404_p3, %p398_p0 }
  0xba   : > { %v184_v3 = vpop.permute.xlu0 %183 }
  0xbb   : > { %v186_v4 = vmul.f32 %v184_v3, %v180_v2 }
  0xbd   : > { %187 = vst [vmem:[%s176_s6] sm:$0xff] %v186_v4 }
  0xbe   : > { %408 = shalt.err (!%p405_p6)
}
  0xbf   : > { %s409_s26 = scalar_lea.hbm %s623_s21, 128  ;;  %s413_s29 = scalar_lea.hbm %s674_s2, 256 }
  0xc0   : > { %p410_p4 = scmp.ne.s32.totalorder %s623_s21, %s409_s26  ;;  %p414_p1 = scmp.lt.u32.totalorder %s623_s21, %s674_s2 }
  0xc1   : > { %p415_p2 = scmp.lt.u32.totalorder %s413_s29, %s409_s26  ;;  %p417_p8 = scmp.lt.u32.totalorder %s409_s26, %s623_s21 }
  0xc2   : > { %p411_p10 = pnand %p410_p4, %p683_p9 }
  0xc3   : > { %p416_p5 = por %p415_p2, %p414_p1 }
  0xc4   : > { %p412_p12 = pneg %p411_p10 }
  0xc5   : > { %p418_p11 = por %p417_p8, %p416_p5 }
  0xc7   : > { %p419_p0 = pnand %p418_p11, %p412_p12 }
  0xc9   : > { %422 = shalt.err (!%p419_p0)
}
  0xca   : > { %303 = dma.vmem_to_hbm [thread:$0]  (%p683_p9), %s625_s8, 128, %s623_s21, %s189_s18  }
  0xcb PF: > { %s216_s30 = sand.u32 1, %s457_s9   ;;  %p684_p7 = scmp.ne.s32.totalorder %s679_s24, 0 }
  0xcc   : > { %p685_p13 = scmp.ge.s32.totalorder %s477_s14, 2  ;;  %s217_s4 = scalar_lea.sflag [#allocation4], %s216_s30 }
  0xce   : > { %p310_p3 = pnand %p685_p13, %p684_p7 }
  0xd0   : > { %452 = dma.done.wait (!%p310_p3), %s217_s4, 128  }
  0xd1   : > { %454 = vsyncadd (!%p310_p3), %s217_s4, 4294967168  ;;  %s18_s14 = sadd.s32 1, %s477_s14   ;;  %s686_s9 = smov %s461_s10 }
  0xd2   : > { %p15_p6 = scmp.ge.s32.totalorder %s18_s14, 4   ;;  %s687_s10 = smov %s465_s11 }
  0xd3   : > { %s688_s11 = smov %s553_s23  ;;  %s689_s12 = smov %s473_s13 }
  0xd4   : > { %s690_s13 = smov %s692_s17  ;;  %17 = sbr.rel (!%p15_p6) target bundleno = 6 (0x6), region = 74 }
  0xdb   :  { %222 = vsyncpa [#allocation3], 1 }
  0xdc   :  { %224 = vsyncpa [#allocation3 + $0x1], 1 }
  0xdd   :  { %225 = vsyncpa [#allocation4], 1 }
  0xde   :  { %227 = vsyncpa [#allocation4 + $0x1], 1 }

</bundles_post_ra>
